<compile_context>
chip_gen: v5e
topology: v5e:2x2
jax: 0.10.0
libtpu: 0.0.40
codegen_flags: <defaults>
</compile_context>

<pallas_src>
import functools

import jax
import jax.numpy as jnp
from jax.experimental import pallas as pl
from jax.experimental.pallas import tpu as pltpu


def _round_up(n: int, m: int) -> int:
    return ((n + m - 1) // m) * m


def _cdiv(a: int, b: int) -> int:
    return -(-a // b)


def _bf16_compute_supported() -> bool:
    """bf16 VPU/EUP exists on TPU v6e (Trillium) and v7x; not on v5e/v5p/v4."""
    try:
        kind = jax.devices()[0].device_kind.lower()
    except Exception:
        return False
    return any(tag in kind for tag in ("v6", "v7", "trillium"))


def pinn_kernel(inp_ref, w1_ref, b1_ref, w2_ref, b2_ref, w3_ref, b3_ref, out_ref,
                *, compute_dtype):
    # inp_ref: (2, T)   w1: (64, 2) b1: (64, 1)
    # w2: (64, 64) b2: (64, 1)      w3: (1, 64) b3: (1, 1)
    # out_ref: (1, T)
    cdt = compute_dtype

    x_row = inp_ref[0:1, :].astype(cdt)                       # (1, T)
    t_row = inp_ref[1:2, :].astype(cdt)                       # (1, T)

    # Layer 1 on the VPU: K=2 contraction expressed as two broadcast FMAs.
    h1_pre = (w1_ref[:, 0:1].astype(cdt) * x_row
              + w1_ref[:, 1:2].astype(cdt) * t_row
              + b1_ref[...].astype(cdt))                      # (64, T)
    h1 = jnp.tanh(h1_pre)                                     # EUP, cdt precision

    # Layer 2 on the MXU: (64,64) @ (64,T); operands in cdt, accumulation in f32.
    h2_pre = jnp.dot(w2_ref[...].astype(cdt), h1,
                     preferred_element_type=jnp.float32) + b2_ref[...]
    h2 = jnp.tanh(h2_pre.astype(cdt))                         # (64, T)

    # Layer 3 head: (1,64) @ (64,T) -> lane-dense (1, T); bias add + store in f32.
    out = jnp.dot(w3_ref[...].astype(cdt), h2,
                  preferred_element_type=jnp.float32) + b3_ref[...]
    out_ref[...] = out.astype(out_ref.dtype)


def _select_tiling(n: int, tile_n: int):
    """Return (tile, n_tiles, padded): tile % 128 == 0, padded = tile*n_tiles >= n.

    Once the work spans more than one 128-lane tile, force an even number (>= 2)
    of grid steps so the "parallel" grid axis keeps both v7x TensorCores busy.
    """
    lanes = _round_up(max(n, 1), 128)
    tile_n = max(128, _round_up(tile_n, 128))
    if lanes >= 256:
        n_tiles = max(2, _cdiv(lanes, tile_n))
        if n_tiles % 2:
            n_tiles += 1
        tile = _round_up(_cdiv(lanes, n_tiles), 128)
    else:
        tile, n_tiles = lanes, 1
    return tile, n_tiles, tile * n_tiles


def pinn_forward(x, t, params, *, tile_n: int = 8192, use_bf16=None):
    """x, t: (N, 1) float32 -> (N, 1) float32 (PINN forward pass)."""
    w1, b1, w2, b2, w3, b3 = params
    N = x.shape[0]
    if use_bf16 is None:
        use_bf16 = _bf16_compute_supported()
    compute_dtype = jnp.bfloat16 if use_bf16 else jnp.float32

    # Batch-on-lanes layout: (2, N). (N,1)->(1,N) is a contiguous reshape.
    inp = jnp.concatenate(
        [x.reshape(1, -1), t.reshape(1, -1)], axis=0).astype(jnp.float32)

    tile, n_tiles, padded = _select_tiling(N, tile_n)
    if padded != N:
        inp = jnp.pad(inp, ((0, 0), (0, padded - N)))

    # Biases as column vectors so they broadcast across the lane (batch) axis.
    b1c = b1.reshape(-1, 1).astype(jnp.float32)
    b2c = b2.reshape(-1, 1).astype(jnp.float32)
    b3c = b3.reshape(-1, 1).astype(jnp.float32)

    def resident(shape):
        # Constant block index -> fetched once, stays resident in VMEM.
        return pl.BlockSpec(shape, lambda i: (0, 0))

    out = pl.pallas_call(
        functools.partial(pinn_kernel, compute_dtype=compute_dtype),
        out_shape=jax.ShapeDtypeStruct((1, padded), jnp.float32),
        grid=(n_tiles,),
        in_specs=[
            pl.BlockSpec((2, tile), lambda i: (0, i)),        # batch tile
            resident(w1.shape), resident(b1c.shape),
            resident(w2.shape), resident(b2c.shape),
            resident(w3.shape), resident(b3c.shape),
        ],
        out_specs=pl.BlockSpec((1, tile), lambda i: (0, i)),  # lane-dense store
        compiler_params=pltpu.CompilerParams(
            dimension_semantics=("parallel",),                # megacore on v7x
            vmem_limit_bytes=32 * 1024 * 1024,                # safe on v5e/v6e/v7x
        ),
    )(inp, w1.astype(jnp.float32), b1c,
      w2.astype(jnp.float32), b2c, w3.astype(jnp.float32), b3c)

    # (1, padded) -> (padded, 1) is a contiguous reshape; drop padding rows.
    return out.reshape(padded, 1)[:N]


def init_params(key):
    """PyTorch nn.Linear-style init: weight (out, in), bias (out,), U[-1/sqrt(fan_in), ...]."""
    def linear(key, fan_in, fan_out):
        kw, kb = jax.random.split(key)
        bound = 1.0 / jnp.sqrt(jnp.float32(fan_in))
        w = jax.random.uniform(kw, (fan_out, fan_in), jnp.float32, -bound, bound)
        b = jax.random.uniform(kb, (fan_out,), jnp.float32, -bound, bound)
        return w, b

    k1, k2, k3 = jax.random.split(key, 3)
    w1, b1 = linear(k1, 2, 64)
    w2, b2 = linear(k2, 64, 64)
    w3, b3 = linear(k3, 64, 1)
    return (w1, b1, w2, b2, w3, b3)


def pinn_reference(x, t, params):
    w1, b1, w2, b2, w3, b3 = params
    inp = jnp.concatenate([x, t], axis=1)                     # (N, 2)
    h1 = jnp.tanh(inp @ w1.T + b1)
    h2 = jnp.tanh(h1 @ w2.T + b2)
    return h2 @ w3.T + b3


if __name__ == "__main__":
    key = jax.random.PRNGKey(0)
    kp, _ = jax.random.split(key)
    params = init_params(kp)

    # Collocation axes from the spec: x = t = linspace(0, 1, 100).
    N = 100
    x = jnp.linspace(0.0, 1.0, N, dtype=jnp.float32).reshape(N, 1)
    t = jnp.linspace(0.0, 1.0, N, dtype=jnp.float32).reshape(N, 1)

    # (1) Strict check: f32 path is bit-comparable with the pure-JAX reference.
    out = jax.block_until_ready(pinn_forward(x, t, params, use_bf16=False))
    ref = pinn_reference(x, t, params)
    assert out.shape == (N, 1)
    assert jnp.allclose(out, ref, atol=1e-5, rtol=1e-5)

    # (2) Auto path (bf16 activations/tanh/MXU operands on v6e/v7x, f32 elsewhere)
    #     on the full 100x100 collocation mesh: multi-tile grid with an even tile
    #     count, so the v7x megacore split and tile amortization are exercised.
    xx, tt = jnp.meshgrid(x[:, 0], t[:, 0], indexing="ij")
    xm = xx.reshape(-1, 1)
    tm = tt.reshape(-1, 1)
    out_m = jax.block_until_ready(pinn_forward(xm, tm, params))
    ref_m = pinn_reference(xm, tm, params)
    assert out_m.shape == (N * N, 1)
    assert bool(jnp.all(jnp.isfinite(out_m)))
    if _bf16_compute_supported():
        # bf16 activations / tanh / MXU operands -> relaxed tolerance.
        assert jnp.allclose(out_m, ref_m, atol=2e-1, rtol=1e-1)
    else:
        assert jnp.allclose(out_m, ref_m, atol=1e-4, rtol=1e-4)

    print("KERNEL_OK")
</pallas_src>

<mosaic_0001>
module attributes {stable_mosaic.version = 11 : i64} {
  func.func @pinn_kernel(%arg0: i32, %arg1: memref<2x128xf32, #tpu.memory_space<vmem>>, %arg2: memref<64x2xf32, #tpu.memory_space<vmem>>, %arg3: memref<64x1xf32, #tpu.memory_space<vmem>>, %arg4: memref<64x64xf32, #tpu.memory_space<vmem>>, %arg5: memref<64x1xf32, #tpu.memory_space<vmem>>, %arg6: memref<1x64xf32, #tpu.memory_space<vmem>>, %arg7: memref<1x1xf32, #tpu.memory_space<vmem>>, %arg8: memref<1x128xf32, #tpu.memory_space<vmem>>) attributes {dimension_semantics = [#tpu.dimension_semantics<parallel>], iteration_bounds = array<i64: 1>, scalar_prefetch = 0 : i64, scratch_operands = 0 : i64, tpu.core_type = #tpu.core_type<tc>, window_params = [{transform_indices = @transform_0, window_bounds = array<i64: 2, 128>}, {pipeline_mode = #tpu.pipeline_mode<synchronous>, transform_indices = @transform_1, window_bounds = array<i64: 64, 2>}, {pipeline_mode = #tpu.pipeline_mode<synchronous>, transform_indices = @transform_2, window_bounds = array<i64: 64, 1>}, {pipeline_mode = #tpu.pipeline_mode<synchronous>, transform_indices = @transform_3, window_bounds = array<i64: 64, 64>}, {pipeline_mode = #tpu.pipeline_mode<synchronous>, transform_indices = @transform_4, window_bounds = array<i64: 64, 1>}, {pipeline_mode = #tpu.pipeline_mode<synchronous>, transform_indices = @transform_5, window_bounds = array<i64: 1, 64>}, {pipeline_mode = #tpu.pipeline_mode<synchronous>, transform_indices = @transform_6, window_bounds = array<i64: 1, 1>}, {transform_indices = @transform_7, window_bounds = array<i64: 1, 128>}]} {
    %c0 = arith.constant 0 : index
    %c0_0 = arith.constant 0 : index
    %0 = vector.load %arg1[%c0, %c0_0] : memref<2x128xf32, #tpu.memory_space<vmem>>, vector<1x128xf32>
    %c1 = arith.constant 1 : index
    %c0_1 = arith.constant 0 : index
    %1 = vector.load %arg1[%c1, %c0_1] : memref<2x128xf32, #tpu.memory_space<vmem>>, vector<1x128xf32>
    %c0_2 = arith.constant 0 : index
    %c0_3 = arith.constant 0 : index
    %2 = vector.load %arg2[%c0_2, %c0_3] : memref<64x2xf32, #tpu.memory_space<vmem>>, vector<64x1xf32>
    %3 = vector.broadcast %2 : vector<64x1xf32> to vector<64x128xf32>
    %4 = vector.broadcast %0 : vector<1x128xf32> to vector<64x128xf32>
    %5 = arith.mulf %3, %4 : vector<64x128xf32>
    %c0_4 = arith.constant 0 : index
    %c1_5 = arith.constant 1 : index
    %6 = vector.load %arg2[%c0_4, %c1_5] : memref<64x2xf32, #tpu.memory_space<vmem>>, vector<64x1xf32>
    %7 = vector.broadcast %6 : vector<64x1xf32> to vector<64x128xf32>
    %8 = vector.broadcast %1 : vector<1x128xf32> to vector<64x128xf32>
    %9 = arith.mulf %7, %8 : vector<64x128xf32>
    %10 = arith.addf %5, %9 : vector<64x128xf32>
    %c0_6 = arith.constant 0 : index
    %c0_7 = arith.constant 0 : index
    %11 = vector.load %arg3[%c0_6, %c0_7] : memref<64x1xf32, #tpu.memory_space<vmem>>, vector<64x1xf32>
    %12 = vector.broadcast %11 : vector<64x1xf32> to vector<64x128xf32>
    %13 = arith.addf %10, %12 : vector<64x128xf32>
    %14 = math.tanh %13 : vector<64x128xf32>
    %c0_8 = arith.constant 0 : index
    %c0_9 = arith.constant 0 : index
    %15 = vector.load %arg4[%c0_8, %c0_9] : memref<64x64xf32, #tpu.memory_space<vmem>>, vector<64x64xf32>
    %cst = arith.constant dense<0.000000e+00> : vector<64x128xf32>
    %16 = tpu.matmul %15, %14, %cst {dimension_numbers = #tpu.dot_dimension_numbers<[1], [0], [0], [1], [0, 0, 1, 1], [], []>} : vector<64x64xf32>, vector<64x128xf32>, vector<64x128xf32> -> vector<64x128xf32>
    %c0_10 = arith.constant 0 : index
    %c0_11 = arith.constant 0 : index
    %17 = vector.load %arg5[%c0_10, %c0_11] : memref<64x1xf32, #tpu.memory_space<vmem>>, vector<64x1xf32>
    %18 = vector.broadcast %17 : vector<64x1xf32> to vector<64x128xf32>
    %19 = arith.addf %16, %18 : vector<64x128xf32>
    %20 = math.tanh %19 : vector<64x128xf32>
    %c0_12 = arith.constant 0 : index
    %c0_13 = arith.constant 0 : index
    %21 = vector.load %arg6[%c0_12, %c0_13] : memref<1x64xf32, #tpu.memory_space<vmem>>, vector<1x64xf32>
    %cst_14 = arith.constant dense<0.000000e+00> : vector<1x128xf32>
    %22 = tpu.matmul %21, %20, %cst_14 {dimension_numbers = #tpu.dot_dimension_numbers<[1], [0], [0], [1], [0, 0, 1, 1], [], []>} : vector<1x64xf32>, vector<64x128xf32>, vector<1x128xf32> -> vector<1x128xf32>
    %c0_15 = arith.constant 0 : index
    %c0_16 = arith.constant 0 : index
    %23 = vector.load %arg7[%c0_15, %c0_16] : memref<1x1xf32, #tpu.memory_space<vmem>>, vector<1x1xf32>
    %24 = vector.broadcast %23 : vector<1x1xf32> to vector<1x128xf32>
    %25 = arith.addf %22, %24 : vector<1x128xf32>
    %c0_17 = arith.constant 0 : index
    %c0_18 = arith.constant 0 : index
    %26 = vector.load %arg8[%c0_17, %c0_18] : memref<1x128xf32, #tpu.memory_space<vmem>>, vector<1x128xf32>
    tpu.vector_store %arg8[%c0_17, %c0_18], %25 {strides = array<i32>} : memref<1x128xf32, #tpu.memory_space<vmem>>, vector<1x128xf32>,
    return
  }
  func.func @transform_0(%arg0: i32) -> (i32, i32) {
    %c0_i32 = arith.constant 0 : i32
    %c0_i32_0 = arith.constant 0 : i32
    return %c0_i32, %arg0 : i32, i32
  }
  func.func @transform_1(%arg0: i32) -> (i32, i32) {
    %c0_i32 = arith.constant 0 : i32
    %c0_i32_0 = arith.constant 0 : i32
    %c0_i32_1 = arith.constant 0 : i32
    return %c0_i32, %c0_i32_0 : i32, i32
  }
  func.func @transform_2(%arg0: i32) -> (i32, i32) {
    %c0_i32 = arith.constant 0 : i32
    %c0_i32_0 = arith.constant 0 : i32
    %c0_i32_1 = arith.constant 0 : i32
    return %c0_i32, %c0_i32_0 : i32, i32
  }
  func.func @transform_3(%arg0: i32) -> (i32, i32) {
    %c0_i32 = arith.constant 0 : i32
    %c0_i32_0 = arith.constant 0 : i32
    %c0_i32_1 = arith.constant 0 : i32
    return %c0_i32, %c0_i32_0 : i32, i32
  }
  func.func @transform_4(%arg0: i32) -> (i32, i32) {
    %c0_i32 = arith.constant 0 : i32
    %c0_i32_0 = arith.constant 0 : i32
    %c0_i32_1 = arith.constant 0 : i32
    return %c0_i32, %c0_i32_0 : i32, i32
  }
  func.func @transform_5(%arg0: i32) -> (i32, i32) {
    %c0_i32 = arith.constant 0 : i32
    %c0_i32_0 = arith.constant 0 : i32
    %c0_i32_1 = arith.constant 0 : i32
    return %c0_i32, %c0_i32_0 : i32, i32
  }
  func.func @transform_6(%arg0: i32) -> (i32, i32) {
    %c0_i32 = arith.constant 0 : i32
    %c0_i32_0 = arith.constant 0 : i32
    %c0_i32_1 = arith.constant 0 : i32
    return %c0_i32, %c0_i32_0 : i32, i32
  }
  func.func @transform_7(%arg0: i32) -> (i32, i32) {
    %c0_i32 = arith.constant 0 : i32
    %c0_i32_0 = arith.constant 0 : i32
    return %c0_i32, %arg0 : i32, i32
  }
}

</mosaic_0001>

<bundles_post_ra>
// kernel: tpu_custom_call.1
= control target key start
LH: loop header
LB: loop body
LE: loop exit
PB: predicated region body
PF: predicated region fallthrough
CT: control target
= control target key end

     0   :  { %s639_s0 = inlined_call_operand.vmem [shape: f32[2,128], index: 0, kind: input, shape index: {}]   ;;  %s640_s1 = inlined_call_operand.vmem [shape: f32[64,2], index: 1, kind: input, shape index: {}]   ;;  %s641_s2 = inlined_call_operand.vmem [shape: f32[64,1], index: 2, kind: input, shape index: {}]   ;;  %s642_s3 = inlined_call_operand.vmem [shape: f32[64,64], index: 3, kind: input, shape index: {}]   ;;  %s643_s4 = inlined_call_operand.vmem [shape: f32[64,1], index: 4, kind: input, shape index: {}]   ;;  %s644_s5 = inlined_call_operand.vmem [shape: f32[1,64], index: 5, kind: input, shape index: {}]   ;;  %s645_s6 = inlined_call_operand.<no memory space> [shape: f32[1,1], index: 6, kind: input, shape index: {}]   ;;  %s646_s7 = inlined_call_operand.hbm [shape: f32[1,128], index: 7, kind: output, shape index: {}]  }
   0x1   :  { %v12_v0 = vstv %s645_s6 }
   0x2   :  { %13 = vst [vmem:[#allocation2] sm:$0x1] %v12_v0 }
   0x3   :  { %v38_v1 = vld [vmem:[%s640_s1 + $0x38] sm:$0xff]  ;;  %v37_v2 = vld [vmem:[%s640_s1 + $0x30] sm:$0xff]  ;;  %v36_v3 = vld [vmem:[%s640_s1 + $0x28] sm:$0xff]  ;;  %v476_v4 = vmov 0  }
   0x4   :  { %411 = vset.pattern.permute.xlu2 %v476_v4  ;;  %409 = vset.pattern.permute.xlu1 %v476_v4 }
   0x5   :  { %407 = vset.pattern.permute.xlu0 %v476_v4  ;;  %71 = vperm.xlu1 %409, %v37_v2  }
   0x6   :  { %76 = vperm.xlu0 %407, %v38_v1   ;;  %66 = vperm.xlu2 %411, %v36_v3  }
   0x7   :  { %14 = vsyncpa [#allocation4], 0  ;;  %v477_v5 = vmov 1   ;;  %v35_v6 = vld [vmem:[%s640_s1 + $0x20] sm:$0xff]  ;;  %v144_v7 = vld [vmem:[%s641_s2 + $0x38] sm:$0xff]  ;;  %vm257_vm0 = vcmask 523264  }
   0x8   :  { %v34_v8 = vld [vmem:[%s640_s1 + $0x18] sm:$0xff]  ;;  %v143_v9 = vld [vmem:[%s641_s2 + $0x30] sm:$0xff]  ;;  %v142_v11 = vld [vmem:[%s641_s2 + $0x28] sm:$0xff]  ;;  %s478_s17 = smov [#allocation3]   ;;  %s370_s21 = sshll.u32 %s646_s7, 4  ;;  %s371_s21 = int_to_ptr.hbm [resolvable:$true] %s370_s21 }
   0x9   :  { %v33_v10 = vld [vmem:[%s640_s1 + $0x10] sm:$0xff]  ;;  %v32_v12 = vld [vmem:[%s640_s1 + $0x8] sm:$0xff]  ;;  %v141_v13 = vld [vmem:[%s641_s2 + $0x20] sm:$0xff]  ;;  %s368_s18 = sshll.u32 %s478_s17, 4  ;;  %s369_s18 = int_to_ptr.vmem [resolvable:$true] %s368_s18 }
   0xa   :  { %v31_v14 = vld [vmem:[%s640_s1] sm:$0xff]  ;;  %v140_v15 = vld [vmem:[%s641_s2 + $0x18] sm:$0xff]  ;;  %v139_v16 = vld [vmem:[%s641_s2 + $0x10] sm:$0xff] }
   0xb   :  { %v137_v17 = vld [vmem:[%s641_s2] sm:$0xff]  ;;  %v138_v18 = vld [vmem:[%s641_s2 + $0x8] sm:$0xff]  ;;  %v216_v19 = vld [vmem:[%s643_s4 + $0x38] sm:$0xff] }
   0xc   :  { %v212_v20 = vld [vmem:[%s643_s4 + $0x18] sm:$0xff]  ;;  %v215_v21 = vld [vmem:[%s643_s4 + $0x30] sm:$0xff]  ;;  %v214_v22 = vld [vmem:[%s643_s4 + $0x28] sm:$0xff] }
   0xd   :  { %410 = vset.pattern.permute.xlu1 %v477_v5  ;;  %v209_v23 = vld [vmem:[%s643_s4] sm:$0xff]  ;;  %v211_v25 = vld [vmem:[%s643_s4 + $0x10] sm:$0xff]  ;;  %v210_v26 = vld [vmem:[%s643_s4 + $0x8] sm:$0xff] }
   0xe   :  { %408 = vset.pattern.permute.xlu0 %v477_v5  ;;  %412 = vset.pattern.permute.xlu2 %v477_v5  ;;  %v213_v24 = vld [vmem:[%s643_s4 + $0x20] sm:$0xff] }
   0xf   :  { %117 = vperm.xlu0 %408, %v38_v1   ;;  %113 = vperm.xlu1 %410, %v37_v2   ;;  %v332_v27 = vld [vmem:[#allocation2] sm:$0x1]  ;;  %v417_v35 = vld [vmem:[%s639_s0 + $0x1] ss:$0 sm:$0xff] }
  0x10   :  { %109 = vperm.xlu2 %412, %v36_v3   ;;  %v416_v36 = vld [vmem:[%s639_s0] ss:$0 sm:$0xff] }
  0x17   :  { %413 = vset.pattern.permute.xlu1 %v476_v4  ;;  %105 = vperm.xlu0 %408, %v35_v6  }
  0x18   :  { %414 = vset.pattern.permute.xlu2 %v476_v4  ;;  %182 = vperm.xlu1 %413, %v144_v7  }
  0x19   :  { %61 = vperm.xlu2 %414, %v35_v6  }
  0x1f   :  { %101 = vperm.xlu0 %408, %v34_v8  }
  0x20   :  { %177 = vperm.xlu1 %413, %v143_v9  }
  0x21   :  { %56 = vperm.xlu2 %414, %v34_v8  }
  0x27   :  { %97 = vperm.xlu0 %408, %v33_v10  }
  0x28   :  { %172 = vperm.xlu1 %413, %v142_v11  }
  0x29   :  { %51 = vperm.xlu2 %414, %v33_v10  }
  0x2f   :  { %93 = vperm.xlu0 %408, %v32_v12  }
  0x30   :  { %167 = vperm.xlu1 %413, %v141_v13  }
  0x31   :  { %46 = vperm.xlu2 %414, %v32_v12  }
  0x37   :  { %89 = vperm.xlu0 %408, %v31_v14  }
  0x38   :  { %162 = vperm.xlu1 %413, %v140_v15  }
  0x39   :  { %41 = vperm.xlu2 %414, %v31_v14  }
  0x3f   :  { %415 = vset.pattern.permute.xlu0 %v476_v4 }
  0x40   :  { %157 = vperm.xlu1 %413, %v139_v16   ;;  %147 = vperm.xlu0 %415, %v137_v17  }
  0x41   :  { %152 = vperm.xlu2 %414, %v138_v18  }
  0x48   :  { %254 = vperm.xlu1 %413, %v216_v19   ;;  %234 = vperm.xlu0 %415, %v212_v20  }
  0x49   :  { %249 = vperm.xlu2 %414, %v215_v21  }
  0x50   :  { %244 = vperm.xlu1 %413, %v214_v22   ;;  %219 = vperm.xlu0 %415, %v209_v23  }
  0x51   :  { %239 = vperm.xlu2 %414, %v213_v24  }
  0x58   :  { %229 = vperm.xlu1 %413, %v211_v25  }
  0x59   :  { %224 = vperm.xlu2 %414, %v210_v26  }
  0x60   :  { %335 = vperm.xlu1 %413, %v332_v27   ;;  %v67_v28 = vpop.permute.xlu2 %66 }
  0x61   :  { %v85_v52 = vmul.f32 %v416_v36, %v67_v28 }
  0x6a   :  { %v110_v29 = vpop.permute.xlu2 %109 }
  0x6b   :  { %v126_v53 = vmul.f32 %v417_v35, %v110_v29  ;;  %v201_v29 = vld [vmem:[%s642_s3] sm:$0xff] }
  0x6d   :  { %v134_v55 = vadd.f32 %v126_v53, %v85_v52 }
  0x73   :  { %v62_v32 = vpop.permute.xlu2 %61 }
  0x74   :  { %v84_v59 = vmul.f32 %v416_v36, %v62_v32  ;;  %v206_v32 = vld [vmem:[%s642_s3 + $0x28] sm:$0xff] }
  0x77   :  { %v72_v30 = vpop.permute.xlu1 %71 }
  0x78   :  { %v77_v31 = vpop.permute.xlu0 %76  ;;  %v86_v45 = vmul.f32 %v416_v36, %v72_v30 }
  0x79   :  { %v87_v38 = vmul.f32 %v416_v36, %v77_v31  ;;  %v203_v31 = vld [vmem:[%s642_s3 + $0x10] sm:$0xff] }
  0x7b   :  { %v57_v39 = vpop.permute.xlu2 %56 }
  0x7c   :  { %v83_v4 = vmul.f32 %v416_v36, %v57_v39 }
  0x81   :  { %v118_v33 = vpop.permute.xlu0 %117  ;;  %v114_v34 = vpop.permute.xlu1 %113 }
  0x82   :  { %v128_v37 = vmul.f32 %v417_v35, %v118_v33  ;;  %v127_v44 = vmul.f32 %v417_v35, %v114_v34  ;;  %v202_v33 = vld [vmem:[%s642_s3 + $0x8] sm:$0xff]  ;;  %v204_v34 = vld [vmem:[%s642_s3 + $0x18] sm:$0xff] }
  0x83   :  { %v52_v50 = vpop.permute.xlu2 %51 }
  0x84   :  { %v136_v41 = vadd.f32 %v128_v37, %v87_v38  ;;  %v135_v47 = vadd.f32 %v127_v44, %v86_v45  ;;  %v82_v14 = vmul.f32 %v416_v36, %v52_v50  ;;  %v208_v37 = vld [vmem:[%s642_s3 + $0x38] sm:$0xff] }
  0x89   :  { %v106_v40 = vpop.permute.xlu0 %105 }
  0x8a   :  { %v183_v42 = vpop.permute.xlu1 %182  ;;  %v125_v60 = vmul.f32 %v417_v35, %v106_v40 }
  0x8b   :  { %v192_v43 = vadd.f32 %v183_v42, %v136_v41  ;;  %v47_v61 = vpop.permute.xlu2 %46 }
  0x8c   :  { %v133_v63 = vadd.f32 %v125_v60, %v84_v59  ;;  %v81_v12 = vmul.f32 %v416_v36, %v47_v61 }
  0x8d   :  { %418 = vtanh.f32 %v192_v43 }
  0x91   :  { %v102_v46 = vpop.permute.xlu0 %101 }
  0x92   :  { %v178_v48 = vpop.permute.xlu1 %177  ;;  %v124_v3 = vmul.f32 %v417_v35, %v102_v46 }
  0x93   :  { %v419_v49 = vpop.eup %418  ;;  %v191_v51 = vadd.f32 %v178_v48, %v135_v47  ;;  %v42_v5 = vpop.permute.xlu2 %41 }
  0x94   :  { %290 = vmatpush.msra.mxu0 %v419_v49  ;;  %388 = vmatpush.msra.mxu2 %v419_v49  ;;  %v132_v7 = vadd.f32 %v124_v3, %v83_v4  ;;  %v80_v17 = vmul.f32 %v416_v36, %v42_v5  ;;  %v205_v36 = vld [vmem:[%s642_s3 + $0x20] sm:$0xff] }
  0x95   :  { %420 = vtanh.f32 %v191_v51  ;;  %389 = vmatpush.msra.mxu3 %v419_v49  ;;  %v331_v5 = vld [vmem:[%s644_s5] sm:$0x1] }
  0x99   :  { %v98_v54 = vpop.permute.xlu0 %97 }
  0x9a   :  { %v173_v56 = vpop.permute.xlu1 %172  ;;  %v123_v13 = vmul.f32 %v417_v35, %v98_v54 }
  0x9b   :  { %v421_v57 = vpop.eup %420  ;;  %v190_v58 = vadd.f32 %v173_v56, %v134_v55  ;;  %v153_v18 = vpop.permute.xlu2 %152 }
  0x9c   :  { %291 = vmatpush.msra.mxu0 %v421_v57  ;;  %390 = vmatpush.msra.mxu2 %v421_v57  ;;  %v131_v19 = vadd.f32 %v123_v13, %v82_v14 }
  0x9d   :  { %422 = vtanh.f32 %v190_v58  ;;  %391 = vmatpush.msra.mxu3 %v421_v57 }
  0xa1   :  { %v94_v62 = vpop.permute.xlu0 %93 }
  0xa2   :  { %v168_v0 = vpop.permute.xlu1 %167  ;;  %v122_v10 = vmul.f32 %v417_v35, %v94_v62 }
  0xa3   :  { %v423_v1 = vpop.eup %422  ;;  %v189_v2 = vadd.f32 %v168_v0, %v133_v63  ;;  %v250_v41 = vpop.permute.xlu2 %249 }
  0xa4   :  { %292 = vmatpush.msra.mxu0 %v423_v1  ;;  %392 = vmatpush.msra.mxu2 %v423_v1  ;;  %v130_v15 = vadd.f32 %v122_v10, %v81_v12 }
  0xa5   :  { %424 = vtanh.f32 %v189_v2  ;;  %393 = vmatpush.msra.mxu3 %v423_v1 }
  0xa6   :  { %v186_v23 = vadd.f32 %v153_v18, %v130_v15 }
  0xa9   :  { %v90_v6 = vpop.permute.xlu0 %89 }
  0xaa   :  { %v163_v8 = vpop.permute.xlu1 %162  ;;  %v121_v16 = vmul.f32 %v417_v35, %v90_v6  ;;  %v207_v35 = vld [vmem:[%s642_s3 + $0x30] sm:$0xff] }
  0xab   :  { %v425_v9 = vpop.eup %424  ;;  %v188_v11 = vadd.f32 %v163_v8, %v132_v7  ;;  %v240_v47 = vpop.permute.xlu2 %239 }
  0xac   :  { %293 = vmatpush.msra.mxu0 %v425_v9  ;;  %394 = vmatpush.msra.mxu2 %v425_v9  ;;  %v129_v25 = vadd.f32 %v121_v16, %v80_v17 }
  0xad   :  { %426 = vtanh.f32 %v188_v11  ;;  %395 = vmatpush.msra.mxu3 %v425_v9 }
  0xb2   :  { %v158_v20 = vpop.permute.xlu1 %157  ;;  %v148_v21 = vpop.permute.xlu0 %147 }
  0xb3   :  { %v427_v22 = vpop.eup %426  ;;  %v187_v24 = vadd.f32 %v158_v20, %v131_v19  ;;  %v185_v26 = vadd.f32 %v148_v21, %v129_v25  ;;  %v225_v59 = vpop.permute.xlu2 %224 }
  0xb4   :  { %294 = vmatpush.msra.mxu0 %v427_v22  ;;  %396 = vmatpush.msra.mxu2 %v427_v22 }
  0xb5   :  { %428 = vtanh.f32 %v187_v24  ;;  %397 = vmatpush.msra.mxu3 %v427_v22 }
  0xb6   :  { %430 = vtanh.f32 %v186_v23 }
  0xb7   :  { %432 = vtanh.f32 %v185_v26 }
  0xba   :  { %v255_v40 = vpop.permute.xlu1 %254  ;;  %v235_v50 = vpop.permute.xlu0 %234 }
  0xbb   :  { %v429_v27 = vpop.eup %428 }
  0xbc   :  { %295 = vmatpush.msra.mxu0 %v429_v27  ;;  %398 = vmatpush.msra.mxu2 %v429_v27  ;;  %v431_v28 = vpop.eup %430 }
  0xbd   :  { %399 = vmatpush.msra.mxu3 %v429_v27  ;;  %v433_v30 = vpop.eup %432 }
  0xbe   :  { %296 = vmatpush.msra.mxu0 %v431_v28  ;;  %400 = vmatpush.msra.mxu2 %v431_v28 }
  0xbf   :  { %401 = vmatpush.msra.mxu3 %v431_v28 }
  0xc0   :  { %297 = vmatpush.msra.mxu0 %v433_v30  ;;  %402 = vmatpush.msra.mxu2 %v433_v30 }
  0xc1   :  { %403 = vmatpush.msra.mxu3 %v433_v30  ;;  %379 = vmatmul.msk.f32.vlgmr.msra.gmra.mxu0 %vm257_vm0, %v201_v29 }
  0xc2   :  { %381 = vmatmul.msk.f32.vlgmr.msra.gmra.mxu2 %vm257_vm0, %v203_v31  ;;  %384 = vmatmul.msk.f32.vlgmr.msra.gmra.mxu3 %vm257_vm0, %v206_v32  ;;  %v245_v44 = vpop.permute.xlu1 %244  ;;  %v220_v62 = vpop.permute.xlu0 %219 }
  0xc9   :  { %380 = vmatmul.msk.f32.gmra.mxu0 %vm257_vm0, %v202_v33 }
  0xca   :  { %382 = vmatmul.msk.f32.gmra.mxu2 %vm257_vm0, %v204_v34  ;;  %385 = vmatmul.msk.f32.gmra.mxu3 %vm257_vm0, %v207_v35  ;;  %v230_v55 = vpop.permute.xlu1 %229 }
  0xd2   :  { %383 = vmatmul.msk.f32.gmra.mxu2 %vm257_vm0, %v205_v36  ;;  %386 = vmatmul.msk.f32.gmra.mxu3 %vm257_vm0, %v208_v37  ;;  %v336_v7 = vpop.permute.xlu1 %335 }
  0xd3   :  { %v338_v8 = vperm.slane %v336_v7, 0 }
 0x13e   :  { %v299_v45 = vpop.f32.mrf.mxu0 }
 0x13f   :  { %v300_v0 = vadd.f32 %v299_v45, %v220_v62 }
 0x145   :  { %v305_v38 = vpop.f32.mrf.mxu2  ;;  %v314_v39 = vpop.f32.mrf.mxu3 }
 0x146   :  { %v315_v52 = vadd.f32 %v314_v39, %v245_v44  ;;  %v302_v56 = vpop.f32.mrf.mxu0  ;;  %v306_v58 = vadd.f32 %v305_v38, %v230_v55 }
 0x147   :  { %v303_v61 = vadd.f32 %v302_v56, %v225_v59 }
 0x14d   :  { %v317_v42 = vpop.f32.mrf.mxu3  ;;  %v308_v43 = vpop.f32.mrf.mxu2 }
 0x14e   :  { %v318_v49 = vadd.f32 %v317_v42, %v250_v41  ;;  %v309_v54 = vadd.f32 %v308_v43, %v235_v50 }
 0x155   :  { %v320_v46 = vpop.f32.mrf.mxu3  ;;  %v311_v51 = vpop.f32.mrf.mxu2 }
 0x156   :  { %v321_v48 = vadd.f32 %v320_v46, %v255_v40  ;;  %v312_v53 = vadd.f32 %v311_v51, %v240_v47 }
 0x158   :  { %434 = vtanh.f32 %v321_v48 }
 0x159   :  { %436 = vtanh.f32 %v318_v49 }
 0x15a   :  { %438 = vtanh.f32 %v315_v52 }
 0x15b   :  { %440 = vtanh.f32 %v312_v53 }
 0x15c   :  { %442 = vtanh.f32 %v309_v54 }
 0x15d   :  { %444 = vtanh.f32 %v306_v58 }
 0x15e   :  { %v435_v57 = vpop.eup %434  ;;  %446 = vtanh.f32 %v303_v61 }
 0x15f   :  { %350 = vmatpush.msra.mxu1 %v435_v57  ;;  %v437_v60 = vpop.eup %436  ;;  %448 = vtanh.f32 %v300_v0 }
 0x160   :  { %v439_v63 = vpop.eup %438 }
 0x161   :  { %351 = vmatpush.msra.mxu1 %v437_v60  ;;  %v441_v1 = vpop.eup %440 }
 0x162   :  { %v443_v2 = vpop.eup %442 }
 0x163   :  { %352 = vmatpush.msra.mxu1 %v439_v63  ;;  %v445_v3 = vpop.eup %444 }
 0x164   :  { %v447_v4 = vpop.eup %446 }
 0x165   :  { %353 = vmatpush.msra.mxu1 %v441_v1  ;;  %v449_v6 = vpop.eup %448 }
 0x167   :  { %354 = vmatpush.msra.mxu1 %v443_v2 }
 0x169   :  { %355 = vmatpush.msra.mxu1 %v445_v3 }
 0x16b   :  { %356 = vmatpush.msra.mxu1 %v447_v4 }
 0x16d   :  { %357 = vmatpush.msra.mxu1 %v449_v6 }
 0x16e   :  { %387 = vmatmul.msk.f32.vlgmr.msra.gmra.mxu1 %vm257_vm0, %v331_v5 }
 0x1eb   :  { %v359_v9 = vpop.f32.mrf.mxu1 }
 0x1ec   :  { %v360_v10 = vadd.f32 %v359_v9, %v338_v8 }
 0x1ee   :  { %362 = vst [vmem:[#allocation3] sm:$0x1] %v360_v10 }
 0x1ef   :  { %373 = dma.vmem_to_hbm [thread:$0]  %s369_s18, 16, %s371_s21, [#allocation4]  }
 0x1f0   :  { %474 = dma.done.wait [#allocation4], 16  }
 0x1f1   :  { %475 = vsyncadd [#allocation4], 4294967280 }
 0x1f2   :  { %378 = vsyncpa [#allocation4], 1 }

</bundles_post_ra>
